<compile_context>
chip_gen: v7x
topology: tpu7x:2x2x1
jax: 0.10.0
libtpu: 0.0.40
codegen_flags: <defaults>
</compile_context>

<pallas_src>
import functools

import jax
import jax.numpy as jnp
from jax.experimental import pallas as pl
from jax.experimental.pallas import tpu as pltpu


def _value_head_kernel(x_ref, w1_ref, b1_ref, w2_ref, b2_ref, o_ref, *,
                       precision):
    """Fused Linear -> ReLU -> [Dropout=id] -> Linear(out=1) -> Tanh.

    x_ref : (bt, C)  native (batch, channel) layout -- no wrapper transpose
    w1_ref: (H2, C)  PyTorch nn.Linear layout (out, in), VMEM-resident
    b1_ref: (H2, 1)  column, broadcasts across lanes
    w2_ref: (H2, 1)  column, broadcasts across lanes
    b2_ref: (1,)     SMEM scalar
    o_ref : (1, bt)  lane-dense output row (batch lives on the lane axis)
    """
    # NT matmul: contraction on C (lane dim of both operands) -> (H2, bt),
    # so the batch stays on lanes and the output store is unmasked/lane-dense.
    hT = jax.lax.dot_general(
        w1_ref[...], x_ref[...],
        dimension_numbers=(((1,), (1,)), ((), ())),
        preferred_element_type=jnp.float32,
        precision=precision)                              # (H2, bt) on MXU
    hT = jnp.maximum(hT + b1_ref[...], 0.0)               # bias + ReLU (VPU)
    # Dropout(p) is identity in eval mode -> no-op here.
    # Linear2 has out_features == 1: VPU multiply + sublane (XLU) reduce
    # in full f32 instead of a degenerate 1-column MXU matmul.
    v = jnp.sum(hT * w2_ref[...], axis=0, keepdims=True)  # (1, bt)
    o_ref[...] = jnp.tanh(v + b2_ref[0]).astype(o_ref.dtype)


def _vmem_budget_bytes():
    """Per-generation scoped-VMEM request, with headroom for internal scratch."""
    cap = None
    try:
        cap = getattr(pltpu.get_tpu_info(), "vmem_capacity_bytes", None)
    except Exception:
        cap = None
    if not cap:
        cap = 64 << 20  # conservative fallback: v7x has 64 MiB per TensorCore
    # ~46 MiB on v7x (64 MiB/TC), ~92 MiB on v5e/v6e (128 MiB).
    return int(cap * 0.72)


def _pick_batch_tile(C, H2, budget_bytes):
    """Largest lane-aligned batch tile whose pipelined footprint fits the budget.

    Per-grid-step VMEM footprint (f32):
      x tile, double-buffered:            2 * bt * C * 4
      out row, double-buffered:           2 * bt * 1 * 4
      weights/biases (constant index_map,
      default double-buffered):           2 * (H2*C + 2*H2) * 4
    """
    fixed = 2 * (H2 * C + 2 * H2) * 4
    avail = max(budget_bytes - fixed, 0)
    max_bt = avail // (2 * 4 * (C + 1))
    for t in (2048, 1024, 512, 256, 128):
        if t <= max_bt:
            return t
    return 128  # last resort; still lane-aligned


def value_predictor_forward(graph_embedding, w1, b1, w2, b2, *,
                            batch_tile=None,
                            precision=jax.lax.Precision.DEFAULT):
    """Pallas implementation of ValuePredictor.forward (inference path).

    graph_embedding: (B, in_channels) float32 -- consumed in native layout.
    w1: (in_channels, hidden_dim // 2)   b1: (hidden_dim // 2,)
    w2: (hidden_dim // 2, 1)             b2: (1,)
    precision: pass jax.lax.Precision.HIGHEST for strict fp32-GEMM parity with
      PyTorch at large in_channels (default accepts bf16-pass MXU error).
    returns: (B,) float32
    """
    B, C = graph_embedding.shape
    H2 = w1.shape[1]

    # Cheap, tiny layout plumbing (weights only -- x is NOT transposed).
    w1_t = w1.T                      # (H2, C): PyTorch (out, in) layout
    b1_col = b1.reshape(H2, 1)
    w2_col = w2.reshape(H2, 1)
    b2_s = b2.reshape(1)

    budget = _vmem_budget_bytes()
    bt = batch_tile if batch_tile is not None else _pick_batch_tile(C, H2, budget)

    kernel = functools.partial(_value_head_kernel, precision=precision)
    cost = pl.CostEstimate(
        flops=2 * B * C * H2 + 4 * B * H2 + 2 * B,
        transcendentals=B,
        bytes_accessed=4 * (B * C + C * H2 + 2 * H2 + 1 + B),
    )

    if B <= bt:
        # Tiny / single-tile batch: grid-less single full-extent block.
        # No padding needed and no per-step pipeline overhead.
        out = pl.pallas_call(
            kernel,
            out_shape=jax.ShapeDtypeStruct((1, B), jnp.float32),
            in_specs=[
                pl.BlockSpec(memory_space=pltpu.MemorySpace.VMEM),   # x  (B, C)
                pl.BlockSpec(memory_space=pltpu.MemorySpace.VMEM),   # w1 (H2, C)
                pl.BlockSpec(memory_space=pltpu.MemorySpace.VMEM),   # b1 (H2, 1)
                pl.BlockSpec(memory_space=pltpu.MemorySpace.VMEM),   # w2 (H2, 1)
                pl.BlockSpec(memory_space=pltpu.MemorySpace.SMEM),   # b2 (1,)
            ],
            out_specs=pl.BlockSpec(memory_space=pltpu.MemorySpace.VMEM),
            compiler_params=pltpu.CompilerParams(vmem_limit_bytes=budget),
            cost_estimate=cost,
        )(graph_embedding, w1_t, b1_col, w2_col, b2_s)
        return out.reshape(B)   # .squeeze(-1), contiguous

    # Large batch: pad to a whole number of lane-aligned tiles.
    # (512+-wide tiles reach ~85% of HBM roofline vs ~29% at 128-wide; the
    # <1 tile of wasted bandwidth from padding is negligible.)
    n_tiles = pl.cdiv(B, bt)
    B_pad = n_tiles * bt
    x = graph_embedding
    if B_pad != B:
        x = jnp.pad(x, ((0, B_pad - B), (0, 0)))

    out = pl.pallas_call(
        kernel,
        out_shape=jax.ShapeDtypeStruct((1, B_pad), jnp.float32),
        grid=(n_tiles,),
        in_specs=[
            pl.BlockSpec((bt, C), lambda i: (i, 0),
                         memory_space=pltpu.MemorySpace.VMEM),
            pl.BlockSpec((H2, C), lambda i: (0, 0),
                         memory_space=pltpu.MemorySpace.VMEM),
            pl.BlockSpec((H2, 1), lambda i: (0, 0),
                         memory_space=pltpu.MemorySpace.VMEM),
            pl.BlockSpec((H2, 1), lambda i: (0, 0),
                         memory_space=pltpu.MemorySpace.VMEM),
            pl.BlockSpec(memory_space=pltpu.MemorySpace.SMEM),
        ],
        out_specs=pl.BlockSpec((1, bt), lambda i: (0, i),
                               memory_space=pltpu.MemorySpace.VMEM),
        # "parallel" lets v7x shard the batch axis across its 2 TensorCores.
        # TODO(synk): confirm in an xprof profile that megacore sharding kicks
        # in on v7x; if not, split explicitly via pltpu.CORE_PARALLEL.
        compiler_params=pltpu.CompilerParams(
            dimension_semantics=("parallel",),
            vmem_limit_bytes=budget),
        cost_estimate=cost,
    )(x, w1_t, b1_col, w2_col, b2_s)

    # Padded lanes hold tanh(b2 + ...) garbage -- slice them off.
    return out[0, :B]


def init_params(key, in_channels, hidden_dim):
    """Deterministic synthetic init (PyTorch-Linear-like uniform bounds)."""
    h2 = hidden_dim // 2
    k1, k2, k3, k4 = jax.random.split(key, 4)
    bound1 = 1.0 / jnp.sqrt(in_channels)
    bound2 = 1.0 / jnp.sqrt(h2)
    w1 = jax.random.uniform(k1, (in_channels, h2), jnp.float32, -bound1, bound1)
    b1 = jax.random.uniform(k2, (h2,), jnp.float32, -bound1, bound1)
    w2 = jax.random.uniform(k3, (h2, 1), jnp.float32, -bound2, bound2)
    b2 = jax.random.uniform(k4, (1,), jnp.float32, -bound2, bound2)
    return w1, b1, w2, b2


if __name__ == "__main__":
    key = jax.random.PRNGKey(0)
    k_x, k_p, k_x2 = jax.random.split(key, 3)

    in_channels = 32
    hidden_dim = 32   # hidden_dim // 2 = 16
    w1, b1, w2, b2 = init_params(k_p, in_channels, hidden_dim)

    def ref_fn(x):
        # Pure-JAX reference of the same math (dropout = identity in eval).
        return jnp.tanh(jnp.maximum(x @ w1 + b1, 0.0) @ w2 + b2)[:, 0]

    # Case 1: tiny batch -> grid-less single-block path.
    batch = 8
    x_small = jax.random.normal(k_x, (batch, in_channels), jnp.float32)
    out_small = jax.block_until_ready(
        value_predictor_forward(x_small, w1, b1, w2, b2))
    assert out_small.shape == (batch,)
    assert jnp.allclose(out_small, ref_fn(x_small), atol=1e-4, rtol=1e-4)

    # Case 2: ragged batch forced through the tiled pad-and-slice path
    # (batch_tile=128 keeps the self-test shapes small while exercising the
    # grid, the padding, and the output slice).
    batch2 = 300
    x_big = jax.random.normal(k_x2, (batch2, in_channels), jnp.float32)
    out_big = jax.block_until_ready(
        value_predictor_forward(x_big, w1, b1, w2, b2, batch_tile=128))
    assert out_big.shape == (batch2,)
    assert jnp.allclose(out_big, ref_fn(x_big), atol=1e-4, rtol=1e-4)

    print("KERNEL_OK")
</pallas_src>

<mosaic_0001>
module attributes {stable_mosaic.version = 11 : i64} {
  func.func @_value_head_kernel(%arg0: memref<8x32xf32, #tpu.memory_space<vmem>>, %arg1: memref<16x32xf32, #tpu.memory_space<vmem>>, %arg2: memref<16x1xf32, #tpu.memory_space<vmem>>, %arg3: memref<16x1xf32, #tpu.memory_space<vmem>>, %arg4: memref<1xf32, #tpu.memory_space<smem>>, %arg5: memref<1x8xf32, #tpu.memory_space<vmem>>) attributes {dimension_semantics = [], scalar_prefetch = 0 : i64, scratch_operands = 0 : i64, tpu.core_type = #tpu.core_type<tc>} {
    %c0 = arith.constant 0 : index
    %c0_0 = arith.constant 0 : index
    %0 = vector.load %arg1[%c0, %c0_0] : memref<16x32xf32, #tpu.memory_space<vmem>>, vector<16x32xf32>
    %c0_1 = arith.constant 0 : index
    %c0_2 = arith.constant 0 : index
    %1 = vector.load %arg0[%c0_1, %c0_2] : memref<8x32xf32, #tpu.memory_space<vmem>>, vector<8x32xf32>
    %cst = arith.constant dense<0.000000e+00> : vector<16x8xf32>
    %2 = tpu.matmul %0, %1, %cst {dimension_numbers = #tpu.dot_dimension_numbers<[1], [1], [0], [0], [0, 0, 1, 0], [], []>} : vector<16x32xf32>, vector<8x32xf32>, vector<16x8xf32> -> vector<16x8xf32>
    %c0_3 = arith.constant 0 : index
    %c0_4 = arith.constant 0 : index
    %3 = vector.load %arg2[%c0_3, %c0_4] : memref<16x1xf32, #tpu.memory_space<vmem>>, vector<16x1xf32>
    %4 = vector.broadcast %3 : vector<16x1xf32> to vector<16x8xf32>
    %5 = arith.addf %2, %4 : vector<16x8xf32>
    %cst_5 = arith.constant 0.000000e+00 : f32
    %6 = vector.broadcast %cst_5 : f32 to vector<16x8xf32>
    %7 = arith.maximumf %5, %6 : vector<16x8xf32>
    %c0_6 = arith.constant 0 : index
    %c0_7 = arith.constant 0 : index
    %8 = vector.load %arg3[%c0_6, %c0_7] : memref<16x1xf32, #tpu.memory_space<vmem>>, vector<16x1xf32>
    %9 = vector.broadcast %8 : vector<16x1xf32> to vector<16x8xf32>
    %10 = arith.mulf %7, %9 : vector<16x8xf32>
    %cst_8 = arith.constant dense<0.000000e+00> : vector<8xf32>
    %11 = vector.multi_reduction <add>, %10, %cst_8 [0] : vector<16x8xf32> to vector<8xf32>
    %12 = vector.shape_cast %11 : vector<8xf32> to vector<1x8xf32>
    %c0_9 = arith.constant 0 : index
    %13 = memref.load %arg4[%c0_9] : memref<1xf32, #tpu.memory_space<smem>>
    %14 = vector.broadcast %13 : f32 to vector<1x8xf32>
    %15 = arith.addf %12, %14 : vector<1x8xf32>
    %16 = math.tanh %15 : vector<1x8xf32>
    %c0_10 = arith.constant 0 : index
    %c0_11 = arith.constant 0 : index
    %17 = vector.load %arg5[%c0_10, %c0_11] : memref<1x8xf32, #tpu.memory_space<vmem>>, vector<1x8xf32>
    tpu.vector_store %arg5[%c0_10, %c0_11], %16 {strides = array<i32>} : memref<1x8xf32, #tpu.memory_space<vmem>>, vector<1x8xf32>,
    return
  }
}

</mosaic_0001>

<bundles_post_ra>
// kernel: tpu_custom_call.1
= control target key start
LH: loop header
LB: loop body
LE: loop exit
PB: predicated region body
PF: predicated region fallthrough
CT: control target
= control target key end

     0   :  { %vm37_vm0 = vcmask 261120   ;;  %v209_v5 = vmov 0   ;;  %s277_s0 = inlined_call_operand.vmem [shape: f32[8,32], index: 0, kind: input, shape index: {}]   ;;  %s278_s1 = inlined_call_operand.vmem [shape: f32[16,32], index: 1, kind: input, shape index: {}]   ;;  %s279_s2 = inlined_call_operand.vmem [shape: f32[16,1], index: 2, kind: input, shape index: {}]   ;;  %s280_s3 = inlined_call_operand.vmem [shape: f32[16,1], index: 3, kind: input, shape index: {}]   ;;  %s281_s4 = inlined_call_operand.<no memory space> [shape: f32[1], index: 4, kind: input, shape index: {}]   ;;  %s282_s5 = inlined_call_operand.hbm [shape: f32[1,8], index: 5, kind: output, shape index: {}]  }
   0x1   :  { %v24_v0 = vld [vmem:[%s277_s0] sm:$0xff]  ;;  %v23_v4 = vld [vmem:[%s278_s1 + $0x8] sm:$0xff]  ;;  %181 = vset.pattern.permute.xlu0 %v209_v5 }
   0x2   :  { %v22_v1 = vld [vmem:[%s278_s1] sm:$0xff]  ;;  %174 = vmatprep.subr.msk.mxu0 %vm37_vm0, %v24_v0 }
   0x3   :  { %176 = vmatprep.mubr.msk.f32.mxu0 %vm37_vm0, %v22_v1  ;;  %v25_v2 = vld [vmem:[%s279_s2] sm:$0xff]  ;;  %175 = vmatpush3.xpose.msk.msra.mxu0 %vm37_vm0, %v24_v0 }
   0x4   :  { %v124_v3 = vld [vmem:[%s280_s3] sm:$0xff] }
   0x5   :  { %11 = vsyncpa [#allocation4], 0  ;;  %29 = vperm.xlu0 %181, %v25_v2   ;;  %182 = vset.pattern.permute.xlu1 %v209_v5  ;;  %v26_v6 = vld [vmem:[%s279_s2 + $0x8] sm:$0xff]  ;;  %vm138_vm1 = vcmask 64512   ;;  %v149_v28 = vstv %s281_s4  ;;  %vm152_vm2 = vcmask 57344  }
   0x6   :  { %128 = vperm.xlu1 %182, %v124_v3   ;;  %177 = vmatmul.mubr.msk.f32.vlgmr.msra.gmra.mrb[0].mxu0 %vm37_vm0, %v23_v4  ;;  %v125_v7 = vld [vmem:[%s280_s3 + $0x8] sm:$0xff]  ;;  %s210_s3 = smov [#allocation3]  }
   0x7   :  { %s160_s6 = sshll.u32 %s210_s3, 4  ;;  %s161_s6 = int_to_ptr.vmem [resolvable:$true] %s160_s6 }
   0x8   :  { %s185_s7 = scalar_lea.vmem %s161_s6, 16  ;;  %s189_s8 = scalar_lea.vmem %s161_s6, 32 }
   0x9   :  { %34 = vperm.xlu0 %181, %v26_v6   ;;  %p186_p0 = scmp.ne.s32.totalorder %s161_s6, %s185_s7  ;;  %p190_p1 = scmp.lt.s32.totalorder %s161_s6, %s161_s6 }
   0xa   :  { %133 = vperm.xlu1 %182, %v125_v7   ;;  %p191_p2 = scmp.lt.s32.totalorder %s189_s8, %s185_s7 }
   0xc   :  { %p192_p3 = por %p191_p2, %p190_p1 }
   0xe   :  { %p193_p4 = pnand %p192_p3, %p186_p0 }
  0x84   :  { %v30_v8 = vpop.permute.xlu0 %29 }
  0x85   :  { %v129_v9 = vpop.permute.xlu1 %128 }
  0x88   :  { %v35_v10 = vpop.permute.xlu0 %34 }
  0x89   :  { %v134_v16 = vpop.permute.xlu1 %133 }
  0xd9   :  { %v178_v11 = vpop.f32.mrb[0].mxu0 }
  0xda   :  { %v119_v12 = vadd.f32 %v178_v11, %v35_v10  ;;  %v113_v13 = vpop.f32.mrb[1].mxu0 }
  0xdb   :  { %v114_v14 = vadd.f32 %v113_v13, %v30_v8 }
  0xdc   :  { %v123_v15 = vmax.f32 %v119_v12, 0.0 }
  0xdd   :  { %v122_v17 = vmax.f32 %v114_v14, 0.0 }
  0xde   :  { %v137_v18 = vmul.f32 %v134_v16, %v123_v15 }
  0xdf   :  { %v136_v19 = vmul.f32 %v129_v9, %v122_v17 }
  0xe0   :  { %v140_v20 = vsel %vm138_vm1, %v137_v18, 0.0 }
  0xe1   :  { %v139_v21 = vsel %vm138_vm1, %v136_v19, 0.0 }
  0xe2   :  { %v141_v22 = vadd.f32 %v140_v20, %v139_v21 }
  0xe4   :  { %v142_v23 = vrot.slane %v141_v22, 4 }
  0xe6   :  { %v143_v24 = vadd.f32 %v142_v23, %v141_v22 }
  0xe8   :  { %v144_v25 = vrot.slane %v143_v24, 2 }
  0xea   :  { %v145_v26 = vadd.f32 %v144_v25, %v143_v24 }
  0xec   :  { %v146_v27 = vrot.slane %v145_v26, 1 }
  0xee   :  { %v147_v29 = vadd.f32 %v146_v27, %v145_v26 }
  0xf0   :  { %v150_v30 = vadd.f32 %v149_v28, %v147_v29 }
  0xf2   :  { %183 = vtanh.f32 %v150_v30 }
  0xfc   :  { %v184_v31 = vpop.eup %183 }
  0xfd   :  { %153 = vst.msk [vmem:[#allocation3] sm:$0x1] %vm152_vm2, %v184_v31 }
  0xfe   :  { %196 = shalt.err (!%p193_p4)
}
  0xff   :  { %s197_s4 = scalar_lea.hbm %s282_s5, 16 }
 0x100   :  { %p198_p5 = scmp.ne.s32.totalorder %s282_s5, %s197_s4  ;;  %p201_p6 = scmp.lt.u32.totalorder %s197_s4, %s282_s5 }
 0x102   :  { %p203_p7 = pnand %p201_p6, %p198_p5 }
 0x104   :  { %206 = shalt.err (!%p203_p7)
}
 0x105   :  { %163 = dma.vmem_to_hbm [thread:$0]  %s161_s6, 16, %s282_s5, [#allocation4]  }
 0x106   :  { %207 = dma.done.wait [#allocation4], 16  }
 0x107   :  { %208 = vsyncadd [#allocation4], 4294967280 }
 0x108   :  { %167 = vsyncpa [#allocation4], 1 }

</bundles_post_ra>
